<compile_context>
chip_gen: v5e
topology: v5e:2x2
jax: 0.10.0
libtpu: 0.0.40
codegen_flags: <defaults>
</compile_context>

<pallas_src>
import functools

import jax
import jax.numpy as jnp
from jax.experimental import pallas as pl
from jax.experimental.pallas import tpu as pltpu


def _round_up(v: int, m: int) -> int:
    return (v + m - 1) // m * m


def _focal_loss_kernel(x_ref, y_ref, alpha_ref, out_ref, *,
                       gamma: float, ignore_index: int):
    # x_ref:     (1, C, T)      logits, native dtype; classes=sublanes, samples=lanes
    # y_ref:     (1, 1, T)      int32 labels
    # alpha_ref: (C, 1)         f32 per-class weights (resident)
    # out_ref:   (1, 1, 8, 128) f32 per-tile partials: [0,0]=loss sum, [1,0]=valid count
    x = x_ref[0].astype(jnp.float32)            # (C, T)
    y = y_ref[0]                                # (1, T)
    alpha = alpha_ref[...].astype(jnp.float32)  # (C, 1)
    nc, nt = x.shape

    # log_softmax over the class (sublane) axis.
    m = jnp.max(x, axis=0, keepdims=True)                               # (1, T)
    lse = m + jnp.log(jnp.sum(jnp.exp(x - m), axis=0, keepdims=True))   # (1, T)
    log_p = x - lse                                                     # (C, T)

    cls = jax.lax.broadcasted_iota(jnp.int32, (nc, nt), 0)
    sel = cls == y                                                      # (C, T)

    # Fused one-hot "gather": ce_i = -alpha[y_i] * log_p[i, y_i]
    w_log_pt = jnp.sum(jnp.where(sel, alpha * log_p, 0.0),
                       axis=0, keepdims=True)                           # (1, T)
    ce = -w_log_pt

    if gamma == 0.0:
        weighted = ce
    else:
        log_pt = jnp.sum(jnp.where(sel, log_p, 0.0), axis=0, keepdims=True)
        one_m_pt = 1.0 - jnp.exp(log_pt)                                # (1, T)
        gi = int(gamma)
        if float(gi) == gamma and 1 <= gi <= 8:
            # Integer gamma: repeated VPU multiplies instead of pow (log+exp on EUP).
            focal = one_m_pt
            for _ in range(gi - 1):
                focal = focal * one_m_pt
        else:
            focal = one_m_pt ** gamma
        weighted = focal * ce

    valid = y != ignore_index                                           # (1, T)
    loss = jnp.where(valid, weighted, 0.0)                              # (1, T)

    loss_sum = jnp.sum(loss, keepdims=True)                             # (1, 1)
    cnt_sum = jnp.sum(jnp.where(valid, 1.0, 0.0), keepdims=True)        # (1, 1)

    row = jax.lax.broadcasted_iota(jnp.int32, (8, 128), 0)
    lane = jax.lax.broadcasted_iota(jnp.int32, (8, 128), 1)
    part = (jnp.where((row == 0) & (lane == 0), loss_sum, 0.0)
            + jnp.where((row == 1) & (lane == 0), cnt_sum, 0.0))
    out_ref[0, 0] = part


def focal_loss(x, y, alpha=None, gamma: float = 0.0, reduction: str = "mean",
               ignore_index: int = -100, tile_d: int = 8192):
    """JAX/Pallas equivalent of FocalLoss.forward (reduction 'mean' or 'sum')."""
    if reduction not in ("mean", "sum"):
        # TODO(synk): reduction='none' needs a ragged per-valid-sample output;
        # only 'mean' and 'sum' are implemented in the kernel path.
        raise ValueError("Only 'mean' and 'sum' reductions are supported here.")

    if x.ndim > 2:
        b, c = x.shape[0], x.shape[1]
        x3 = x.reshape(b, c, -1)          # (B, C, D): free reshape, NO transpose
        y2 = y.reshape(b, -1)             # (B, D)
    else:
        n, c = x.shape
        b = 1
        x3 = x.T.reshape(1, c, n)         # small 2-D case: samples onto lanes
        y2 = y.reshape(1, -1)

    d = x3.shape[-1]
    if alpha is None:
        alpha_arr = jnp.ones((c,), jnp.float32)
    else:
        alpha_arr = jnp.asarray(alpha, jnp.float32)
    alpha2 = alpha_arr.reshape(c, 1)

    # Adaptive tile along D: big tiles for small C, scaled down for large C so
    # double-buffered input blocks + in-kernel f32 temporaries stay well under
    # the scoped VMEM limit (re-derived conservatively for v7x's smaller VMEM).
    vmem_budget = 16 * 1024 * 1024
    per_col_bytes = 32 * max(c, 8)        # ~8 live f32 copies of one (C,) column
    t_cap = max(128, (vmem_budget // per_col_bytes) // 128 * 128)
    t = min(int(tile_d), t_cap, _round_up(d, 128))
    t = _round_up(t, 128)

    d_pad = _round_up(d, t)
    if d_pad != d:
        # Padded samples carry ignore_index labels -> masked out in the kernel.
        x3 = jnp.pad(x3, ((0, 0), (0, 0), (0, d_pad - d)))
        y2 = jnp.pad(y2, ((0, 0), (0, d_pad - d)), constant_values=ignore_index)
    y3 = y2.reshape(b, 1, d_pad).astype(jnp.int32)
    n_t = d_pad // t

    kernel = functools.partial(_focal_loss_kernel,
                               gamma=float(gamma),
                               ignore_index=int(ignore_index))

    parts = pl.pallas_call(
        kernel,
        out_shape=jax.ShapeDtypeStruct((b, n_t, 8, 128), jnp.float32),
        grid_spec=pltpu.PrefetchScalarGridSpec(
            num_scalar_prefetch=0,
            grid=(b, n_t),
            in_specs=[
                pl.BlockSpec((1, c, t), lambda bi, ti: (bi, 0, ti)),   # logits tile
                pl.BlockSpec((1, 1, t), lambda bi, ti: (bi, 0, ti)),   # labels tile
                pl.BlockSpec((c, 1), lambda bi, ti: (0, 0)),           # alpha (resident)
            ],
            out_specs=pl.BlockSpec((1, 1, 8, 128),
                                   lambda bi, ti: (bi, ti, 0, 0)),     # per-tile partials
        ),
        compiler_params=pltpu.CompilerParams(
            dimension_semantics=("parallel", "parallel"),
            vmem_limit_bytes=32 * 1024 * 1024),
    )(x3, y3, alpha2)

    loss_sum = jnp.sum(parts[:, :, 0, 0])
    cnt = jnp.sum(parts[:, :, 1, 0])
    if reduction == "mean":
        # PyTorch returns 0.0 when there are no un-ignored labels.
        return jnp.where(cnt > 0, loss_sum / jnp.maximum(cnt, 1.0), 0.0)
    return loss_sum


def _focal_loss_ref(x, y, alpha, gamma, ignore_index, reduction="mean"):
    """Pure-JAX reference mirroring the PyTorch forward (for validation)."""
    if x.ndim > 2:
        c = x.shape[1]
        x = jnp.moveaxis(x, 1, -1).reshape(-1, c)
        y = y.reshape(-1)
    mask = y != ignore_index
    y_safe = jnp.where(mask, y, 0)
    log_p = jax.nn.log_softmax(x.astype(jnp.float32), axis=-1)
    log_pt = jnp.take_along_axis(log_p, y_safe[:, None], axis=-1)[:, 0]
    ce = -alpha[y_safe] * log_pt
    pt = jnp.exp(log_pt)
    focal = jnp.ones_like(pt) if gamma == 0.0 else (1.0 - pt) ** gamma
    loss = jnp.where(mask, focal * ce, 0.0)
    cnt = jnp.sum(mask.astype(jnp.float32))
    if reduction == "mean":
        return jnp.where(cnt > 0, jnp.sum(loss) / jnp.maximum(cnt, 1.0), 0.0)
    return jnp.sum(loss)


if __name__ == "__main__":
    key = jax.random.PRNGKey(0)
    kx, ky, km = jax.random.split(key, 3)

    B, C, H, W = 2, 4, 16, 16
    gamma = 2.0
    ignore_index = -100

    # Deterministic "parameters": per-class alpha weights.
    alpha = jnp.array([0.25, 0.5, 0.75, 1.0], jnp.float32)

    x = jax.random.normal(kx, (B, C, H, W), jnp.float32)          # NCHW logits
    y = jax.random.randint(ky, (B, H, W), 0, C, jnp.int32)        # labels
    # Sprinkle some ignored labels to exercise the mask path.
    ignore_mask = jax.random.bernoulli(km, 0.1, (B, H, W))
    y = jnp.where(ignore_mask, jnp.int32(ignore_index), y)

    out = focal_loss(x, y, alpha=alpha, gamma=gamma,
                     reduction="mean", ignore_index=ignore_index)
    out = jax.block_until_ready(out)

    ref = _focal_loss_ref(x, y, alpha, gamma, ignore_index, reduction="mean")
    assert jnp.allclose(out, ref, rtol=1e-5, atol=1e-5), (out, ref)

    print("KERNEL_OK")
</pallas_src>

<mosaic_0001>
module attributes {stable_mosaic.version = 11 : i64} {
  func.func @_focal_loss_kernel(%arg0: i32, %arg1: i32, %arg2: memref<1x4x256xf32, #tpu.memory_space<vmem>>, %arg3: memref<1x1x256xi32, #tpu.memory_space<vmem>>, %arg4: memref<4x1xf32, #tpu.memory_space<vmem>>, %arg5: memref<1x1x8x128xf32, #tpu.memory_space<vmem>>) attributes {dimension_semantics = [#tpu.dimension_semantics<parallel>, #tpu.dimension_semantics<parallel>], iteration_bounds = array<i64: 2, 1>, scalar_prefetch = 0 : i64, scratch_operands = 0 : i64, tpu.core_type = #tpu.core_type<tc>, window_params = [{transform_indices = @transform_0, window_bounds = array<i64: 1, 4, 256>}, {transform_indices = @transform_1, window_bounds = array<i64: 1, 1, 256>}, {pipeline_mode = #tpu.pipeline_mode<synchronous>, transform_indices = @transform_2, window_bounds = array<i64: 4, 1>}, {transform_indices = @transform_3, window_bounds = array<i64: 1, 1, 8, 128>}]} {
    %c0 = arith.constant 0 : index
    %c0_0 = arith.constant 0 : index
    %c0_1 = arith.constant 0 : index
    %0 = vector.load %arg2[%c0, %c0_0, %c0_1] : memref<1x4x256xf32, #tpu.memory_space<vmem>>, vector<1x4x256xf32>
    %1 = vector.shape_cast %0 : vector<1x4x256xf32> to vector<4x256xf32>
    %c0_2 = arith.constant 0 : index
    %c0_3 = arith.constant 0 : index
    %c0_4 = arith.constant 0 : index
    %2 = vector.load %arg3[%c0_2, %c0_3, %c0_4] : memref<1x1x256xi32, #tpu.memory_space<vmem>>, vector<1x1x256xi32>
    %3 = vector.shape_cast %2 : vector<1x1x256xi32> to vector<1x256xi32>
    %c0_5 = arith.constant 0 : index
    %c0_6 = arith.constant 0 : index
    %4 = vector.load %arg4[%c0_5, %c0_6] : memref<4x1xf32, #tpu.memory_space<vmem>>, vector<4x1xf32>
    %cst = arith.constant dense<0xFF800000> : vector<256xf32>
    %5 = vector.multi_reduction <maximumf>, %1, %cst [0] : vector<4x256xf32> to vector<256xf32>
    %6 = vector.shape_cast %5 : vector<256xf32> to vector<1x256xf32>
    %7 = vector.broadcast %6 : vector<1x256xf32> to vector<4x256xf32>
    %8 = arith.subf %1, %7 : vector<4x256xf32>
    %9 = math.exp %8 : vector<4x256xf32>
    %cst_7 = arith.constant dense<0.000000e+00> : vector<256xf32>
    %10 = vector.multi_reduction <add>, %9, %cst_7 [0] : vector<4x256xf32> to vector<256xf32>
    %11 = vector.shape_cast %10 : vector<256xf32> to vector<1x256xf32>
    %12 = math.log %11 : vector<1x256xf32>
    %13 = arith.addf %6, %12 : vector<1x256xf32>
    %14 = vector.broadcast %13 : vector<1x256xf32> to vector<4x256xf32>
    %15 = arith.subf %1, %14 : vector<4x256xf32>
    %16 = tpu.iota {dimensions = array<i32: 0>} : vector<4x256xi32>
    %17 = vector.broadcast %3 : vector<1x256xi32> to vector<4x256xi32>
    %18 = arith.cmpi eq, %16, %17 : vector<4x256xi32>
    %19 = vector.broadcast %4 : vector<4x1xf32> to vector<4x256xf32>
    %20 = arith.mulf %19, %15 : vector<4x256xf32>
    %cst_8 = arith.constant 0.000000e+00 : f32
    %21 = vector.broadcast %cst_8 : f32 to vector<4x256xf32>
    %22 = arith.select %18, %20, %21 : vector<4x256xi1>, vector<4x256xf32>
    %cst_9 = arith.constant dense<0.000000e+00> : vector<256xf32>
    %23 = vector.multi_reduction <add>, %22, %cst_9 [0] : vector<4x256xf32> to vector<256xf32>
    %24 = vector.shape_cast %23 : vector<256xf32> to vector<1x256xf32>
    %cst_10 = arith.constant 0.000000e+00 : f32
    %25 = vector.broadcast %cst_10 : f32 to vector<1x256xf32>
    %26 = arith.subf %25, %24 : vector<1x256xf32>
    %cst_11 = arith.constant 0.000000e+00 : f32
    %27 = vector.broadcast %cst_11 : f32 to vector<4x256xf32>
    %28 = arith.select %18, %15, %27 : vector<4x256xi1>, vector<4x256xf32>
    %cst_12 = arith.constant dense<0.000000e+00> : vector<256xf32>
    %29 = vector.multi_reduction <add>, %28, %cst_12 [0] : vector<4x256xf32> to vector<256xf32>
    %30 = vector.shape_cast %29 : vector<256xf32> to vector<1x256xf32>
    %31 = math.exp %30 : vector<1x256xf32>
    %cst_13 = arith.constant 1.000000e+00 : f32
    %32 = vector.broadcast %cst_13 : f32 to vector<1x256xf32>
    %33 = arith.subf %32, %31 : vector<1x256xf32>
    %34 = arith.mulf %33, %33 : vector<1x256xf32>
    %35 = arith.mulf %34, %26 : vector<1x256xf32>
    %c-100_i32 = arith.constant -100 : i32
    %36 = vector.broadcast %c-100_i32 : i32 to vector<1x256xi32>
    %37 = arith.cmpi ne, %3, %36 : vector<1x256xi32>
    %cst_14 = arith.constant 0.000000e+00 : f32
    %38 = vector.broadcast %cst_14 : f32 to vector<1x256xf32>
    %39 = arith.select %37, %35, %38 : vector<1x256xi1>, vector<1x256xf32>
    %40 = vector.shape_cast %39 : vector<1x256xf32> to vector<1x1x256xf32>
    %cst_15 = arith.constant dense<0.000000e+00> : vector<1xf32>
    %41 = vector.multi_reduction <add>, %40, %cst_15 [1, 2] : vector<1x1x256xf32> to vector<1xf32>
    %42 = vector.shape_cast %41 : vector<1xf32> to vector<1x1x1xf32>
    %43 = vector.extract %42[0, 0, 0] : f32 from vector<1x1x1xf32>
    %44 = vector.broadcast %43 : f32 to vector<1x1xf32>
    %cst_16 = arith.constant 1.000000e+00 : f32
    %cst_17 = arith.constant 0.000000e+00 : f32
    %45 = vector.broadcast %cst_16 : f32 to vector<1x256xf32>
    %46 = vector.broadcast %cst_17 : f32 to vector<1x256xf32>
    %47 = arith.select %37, %45, %46 : vector<1x256xi1>, vector<1x256xf32>
    %48 = vector.shape_cast %47 : vector<1x256xf32> to vector<1x1x256xf32>
    %cst_18 = arith.constant dense<0.000000e+00> : vector<1xf32>
    %49 = vector.multi_reduction <add>, %48, %cst_18 [1, 2] : vector<1x1x256xf32> to vector<1xf32>
    %50 = vector.shape_cast %49 : vector<1xf32> to vector<1x1x1xf32>
    %51 = vector.extract %50[0, 0, 0] : f32 from vector<1x1x1xf32>
    %52 = vector.broadcast %51 : f32 to vector<1x1xf32>
    %53 = tpu.iota {dimensions = array<i32: 0>} : vector<8x128xi32>
    %54 = tpu.iota {dimensions = array<i32: 1>} : vector<8x128xi32>
    %c0_i32 = arith.constant 0 : i32
    %55 = vector.broadcast %c0_i32 : i32 to vector<8x128xi32>
    %56 = arith.cmpi eq, %53, %55 : vector<8x128xi32>
    %c0_i32_19 = arith.constant 0 : i32
    %57 = vector.broadcast %c0_i32_19 : i32 to vector<8x128xi32>
    %58 = arith.cmpi eq, %54, %57 : vector<8x128xi32>
    %59 = arith.andi %56, %58 : vector<8x128xi1>
    %cst_20 = arith.constant 0.000000e+00 : f32
    %60 = vector.shape_cast %44 : vector<1x1xf32> to vector<1x1xf32>
    %61 = vector.broadcast %60 : vector<1x1xf32> to vector<8x128xf32>
    %62 = vector.broadcast %cst_20 : f32 to vector<8x128xf32>
    %63 = arith.select %59, %61, %62 : vector<8x128xi1>, vector<8x128xf32>
    %c1_i32 = arith.constant 1 : i32
    %64 = vector.broadcast %c1_i32 : i32 to vector<8x128xi32>
    %65 = arith.cmpi eq, %53, %64 : vector<8x128xi32>
    %c0_i32_21 = arith.constant 0 : i32
    %66 = vector.broadcast %c0_i32_21 : i32 to vector<8x128xi32>
    %67 = arith.cmpi eq, %54, %66 : vector<8x128xi32>
    %68 = arith.andi %65, %67 : vector<8x128xi1>
    %cst_22 = arith.constant 0.000000e+00 : f32
    %69 = vector.shape_cast %52 : vector<1x1xf32> to vector<1x1xf32>
    %70 = vector.broadcast %69 : vector<1x1xf32> to vector<8x128xf32>
    %71 = vector.broadcast %cst_22 : f32 to vector<8x128xf32>
    %72 = arith.select %68, %70, %71 : vector<8x128xi1>, vector<8x128xf32>
    %73 = arith.addf %63, %72 : vector<8x128xf32>
    %c0_23 = arith.constant 0 : index
    %c0_24 = arith.constant 0 : index
    %c0_25 = arith.constant 0 : index
    %c0_26 = arith.constant 0 : index
    %74 = vector.load %arg5[%c0_23, %c0_24, %c0_25, %c0_26] : memref<1x1x8x128xf32, #tpu.memory_space<vmem>>, vector<1x1x8x128xf32>
    %75 = vector.shape_cast %74 : vector<1x1x8x128xf32> to vector<8x128xf32>
    %76 = vector.shape_cast %73 : vector<8x128xf32> to vector<1x1x8x128xf32>
    tpu.vector_store %arg5[%c0_23, %c0_24, %c0_25, %c0_26], %76 {strides = array<i32>} : memref<1x1x8x128xf32, #tpu.memory_space<vmem>>, vector<1x1x8x128xf32>,
    return
  }
  func.func @transform_0(%arg0: i32, %arg1: i32) -> (i32, i32, i32) {
    %c0_i32 = arith.constant 0 : i32
    %c0_i32_0 = arith.constant 0 : i32
    return %arg0, %c0_i32, %arg1 : i32, i32, i32
  }
  func.func @transform_1(%arg0: i32, %arg1: i32) -> (i32, i32, i32) {
    %c0_i32 = arith.constant 0 : i32
    %c0_i32_0 = arith.constant 0 : i32
    return %arg0, %c0_i32, %arg1 : i32, i32, i32
  }
  func.func @transform_2(%arg0: i32, %arg1: i32) -> (i32, i32) {
    %c0_i32 = arith.constant 0 : i32
    %c0_i32_0 = arith.constant 0 : i32
    %c0_i32_1 = arith.constant 0 : i32
    return %c0_i32, %c0_i32_0 : i32, i32
  }
  func.func @transform_3(%arg0: i32, %arg1: i32) -> (i32, i32, i32, i32) {
    %c0_i32 = arith.constant 0 : i32
    %c0_i32_0 = arith.constant 0 : i32
    %c0_i32_1 = arith.constant 0 : i32
    return %arg0, %arg1, %c0_i32, %c0_i32_0 : i32, i32, i32, i32
  }
}

</mosaic_0001>

<bundles_post_ra>
// kernel: tpu_custom_call.1
= control target key start
LH: loop header
LB: loop body
LE: loop exit
PB: predicated region body
PF: predicated region fallthrough
CT: control target
= control target key end

     0   :  { %8 = vsyncpa [#allocation3], 0  ;;  %s954_s0 = inlined_call_operand.hbm [shape: f32[2,4,256], index: 0, kind: input, shape index: {}]   ;;  %s955_s1 = inlined_call_operand.vmem [shape: s32[2,1,256], index: 1, kind: input, shape index: {}]   ;;  %s956_s2 = inlined_call_operand.vmem [shape: f32[4,1], index: 2, kind: input, shape index: {}]   ;;  %s957_s3 = inlined_call_operand.hbm [shape: f32[2,1,8,128], index: 3, kind: output, shape index: {}]  }
   0x1   :  { %10 = vsyncpa [#allocation3 + $0x1], 0 }
   0x2   :  { %11 = vsyncpa [#allocation4], 0 }
   0x3   :  { %13 = vsyncpa [#allocation4 + $0x1], 0  ;;  %s774_s12 = smov 0   ;;  %s776_s13 = smov 0  }
   0x4   :  { %s778_s14 = smov 0   ;;  %s780_s15 = smov 0  }
   0x5   :  { %s782_s16 = smov 0   ;;  %s784_s17 = smov 0  }
   0x6 LB: > { %s543_s18 = sadd.s32 4294967295, %s750_s17   ;;  %s544_s19 = sadd.s32 4294967294, %s750_s17   ;;  %s750_s17 = sphi %s784_s17, %s19_s17   ;;  %s746_s16 = sphi %s782_s16, %s970_s16   ;;  %s742_s15 = sphi %s780_s15, %s969_s15   ;;  %s738_s14 = sphi %s778_s14, %s968_s14   ;;  %s734_s13 = sphi %s776_s13, %s967_s13   ;;  %s730_s12 = sphi %s774_s12, %s966_s12  }
   0x7   : > { %s31_s20 = sadd.s32 1, %s746_s16  ;;  %s40_s21 = sadd.s32 1, %s738_s14 }
   0x8   : > { %p33_p0 = scmp.ge.s32.totalorder %s31_s20, 2  ;;  %p47_p1 = scmp.ne.s32.totalorder %s738_s14, %s734_s13 }
   0x9   : > { %p48_p2 = scmp.eq.s32.totalorder %s750_s17, 0  ;;  %p53_p3 = scmp.ne.s32.totalorder %s734_s13, %s730_s12 }
   0xa   : > { %s972_s20 = smov (%p33_p0, %s31_s20), 0  ;;  %p54_p5 = scmp.eq.s32.totalorder %s543_s18, 0 }
   0xb   : > { %p815_p4 = por %p48_p2, %p47_p1  ;;  %s35_s23 = ssub.s32 %s746_s16, %s972_s20 }
   0xc   : > { %p128_p6 = scmp.eq.s32.totalorder %s543_s18, 1  ;;  %p38_p7 = scmp.eq.s32.totalorder %s35_s23, 0 }
   0xd   : > { %p821_p8 = por %p54_p5, %p53_p3  ;;  %p134_p10 = scmp.eq.s32.totalorder %s544_s19, 1 }
   0xe   : > { %p825_p9 = por %p128_p6, %p47_p1  ;;  %p546_p12 = scmp.ge.s32.totalorder %s750_s17, 2 }
   0xf   : > { %s830_s26 = scalar_select %p38_p7, %s738_s14, %s40_s21  }
  0x10   : > { %p832_p11 = por %p134_p10, %p53_p3  ;;  %p575_p13 = scmp.lt.s32.totalorder %s750_s17, 2 }
  0x11   : > { %s157_s28 = sand.u32 1, %s738_s14   ;;  %s558_s30 = sshll.u32 %s746_s16, 3 }
  0x12   : > { %s547_s29 = sshll.u32 %s157_s28, 3  ;;  %s168_s6 = scalar_lea.hbm %s954_s0, %s558_s30 }
  0x13   : > { %s161_s7 = scalar_lea.vmem [#allocation2], %s547_s29  ;;  %s170_s9 = sshll.u32 %s168_s6, 4  ;;  %s171_s9 = int_to_ptr.hbm [resolvable:$true] %s170_s9 }
  0x14   : > { %s172_s8 = sshll.u32 %s161_s7, 4  ;;  %p568_p0 = pnand %p575_p13, %p815_p4  ;;  %s173_s8 = int_to_ptr.vmem [resolvable:$true] %s172_s8 }
  0x15   : > { %p550_p1 = scmp.ge.s32.totalorder %s750_s17, 1  ;;  %p189_p2 = scmp.lt.s32.totalorder %s750_s17, 3 }
  0x16   : > { %s158_s10 = scalar_lea.sflag [#allocation3], %s157_s28 }
  0x17   : > { %570 = dma.hbm_to_vmem [thread:$0]  (!%p568_p0), %s171_s9, 128, %s173_s8, %s158_s10  }
  0x18   : > { %p190_p3 = pnand %p550_p1, %p189_p2 }
  0x19   : > { %s848_s11 = sand.u32 (!%p190_p3), 1, %s734_s13  }
  0x1a   : > { %193 = sbr.rel (%p190_p3) target bundleno = 364 (0x16c), region = 32  ;;  %s551_s18 = sshll.u32 (!%p190_p3), %s848_s11, 3 }
  0x1b   : > { %s196_s19 = scalar_lea.sflag (!%p190_p3), [#allocation3], %s848_s11  ;;  %s199_s21 = scalar_lea.vmem (!%p190_p3), [#allocation2], %s551_s18 }
  0x1f   : > { %721 = dma.done.wait (%p821_p8), %s196_s19, 128  }
  0x20   : > { %723 = vsyncadd (%p821_p8), %s196_s19, 4294967168  ;;  %v752_v0 = vmov 0   ;;  %v243_v1 = vld [vmem:[%s956_s2] sm:$0xf]  ;;  %v241_v2 = vld [vmem:[%s199_s21] sm:$0xff]  ;;  %vm250_vm0 = vcmask 1043456   ;;  %v305_v49 = vlaneseq }
  0x21   : > { %627 = vset.pattern.permute.xlu0 %v752_v0  ;;  %245 = vst [vmem:[#allocation1] ss:$2 sm:$0xff] %v241_v2  ;;  %p233_p4 = scmp.lt.s32.totalorder %s742_s15, 1  ;;  %vm377_vm4 = vcmask 1040384   ;;  %s555_s5 = sshll.u32 %s742_s15, 3 }
  0x22   : > { %313 = vperm.xlu0 %627, %v243_v1   ;;  %v875_v53 = vshrl.u32 %v305_v49, 7  ;;  %s441_s8 = scalar_lea.hbm %s957_s3, %s555_s5  ;;  %s230_s10 = scalar_lea.vmem [#allocation5], %s551_s18 }
  0x23   : > { %s234_s24 = scalar_select %p233_p4, %s742_s15, 1 }
  0x24   : > { %vm418_vm5 = vcmp.eq.s32.totalorder %v875_v53, 0  ;;  %vm423_vm7 = vcmp.eq.s32.totalorder %v875_v53, 1  ;;  %s443_s19 = sshll.u32 %s230_s10, 4  ;;  %s445_s15 = sshll.u32 %s441_s8, 4  ;;  %s444_s19 = int_to_ptr.vmem [resolvable:$true] %s443_s19  ;;  %s446_s15 = int_to_ptr.hbm [resolvable:$true] %s445_s15 }
  0x25   : > { %s553_s28 = sshll.u32 %s234_s24, 1  ;;  %s430_s22 = scalar_lea.sflag [#allocation4], %s848_s11 }
  0x26   : > { %s239_s4 = scalar_lea.vmem %s955_s1, %s553_s28  ;;  %s682_s23 = sshra.s32 %s446_s15, 4  ;;  %s683_s23 = int_to_ptr.hbm [resolvable:$true] %s682_s23 }
  0x27   : > { %v872_v50 = vld [vmem:[%s239_s4] sm:$0x3]  ;;  %s684_s24 = scalar_lea.hbm %s683_s23, 8  ;;  %s688_s29 = scalar_lea.hbm %s957_s3, 16 }
  0x28   : > { %v246_v3 = vld.sshfl [vmem:[#allocation1] sm:$0xff pattern:$0x75316420]  ;;  %v247_v4 = vld.sshfl [vmem:[#allocation1 + $0x8] sm:$0xff pattern:$0x75316420]  ;;  %p685_p5 = scmp.ne.s32.totalorder %s683_s23, %s684_s24  ;;  %p689_p8 = scmp.lt.s32.totalorder %s683_s23, %s957_s3 }
  0x29   : > { %v251_v5 = vsel %vm250_vm0, %v246_v3, -inf  ;;  %v258_v6 = vsel %vm250_vm0, %v247_v4, -inf  ;;  %v307_v54 = vperm.slane %v872_v50, 0  ;;  %v308_v55 = vperm.slane %v872_v50, 1  ;;  %p690_p10 = scmp.lt.s32.totalorder %s688_s29, %s684_s24 }
  0x2a   : > { %v252_v7 = vrot.slane %v251_v5, 4  ;;  %v259_v8 = vrot.slane %v258_v6, 4  ;;  %vm373_vm3 = vcmp.ne.s32.totalorder %v872_v50, 4294967196  ;;  %p686_p6 = pnand %p685_p5, %p825_p9 }
  0x2b   : > { %vm880_vm1 = vcmp.eq.s32.totalorder %v875_v53, %v307_v54  ;;  %vm885_vm2 = vcmp.eq.s32.totalorder %v875_v53, %v308_v55  ;;  %p691_p13 = por %p690_p10, %p689_p8 }
  0x2c   : > { %v253_v9 = vmax.f32 %v251_v5, %v252_v7  ;;  %v260_v10 = vmax.f32 %v258_v6, %v259_v8  ;;  %v753_v7 = vmov 0.0   ;;  %p687_p7 = pneg %p686_p6 }
  0x2d   : > { %v398_v8 = vsel %vm373_vm3, 1.0, %v753_v7 }
  0x2e   : > { %v254_v11 = vrot.slane %v253_v9, 2  ;;  %v261_v12 = vrot.slane %v260_v10, 2  ;;  %p692_p0 = pnand %p691_p13, %p687_p7 }
  0x30   : > { %v255_v13 = vmax.f32 %v253_v9, %v254_v11  ;;  %v262_v14 = vmax.f32 %v260_v10, %v261_v12  ;;  %v400_v10 = vperm.slane %v398_v8, 0  ;;  %v401_v11 = vperm.slane %v398_v8, 1 }
  0x32   : > { %v256_v15 = vrot.slane %v255_v13, 1  ;;  %v263_v16 = vrot.slane %v262_v14, 1 }
  0x34   : > { %v257_v17 = vmax.f32 %v255_v13, %v256_v15  ;;  %v264_v18 = vmax.f32 %v262_v14, %v263_v16  ;;  %v404_v13 = vsel %vm377_vm4, %v400_v10, 0.0  ;;  %v405_v14 = vsel %vm377_vm4, %v401_v11, 0.0 }
  0x35   : > { %v406_v15 = vadd.f32 %v405_v14, %v404_v13  ;;  %v417_v10 = vand.u32 127, %v305_v49 }
  0x36   : > { %v267_v19 = vrot.slane %v264_v18, 4 }
  0x37   : > { %407 = vadd.xlane.f32.xlu1 %v406_v15  ;;  %vm419_vm6 = vcmp.eq.s32.totalorder %v417_v10, 0 }
  0x38   : > { %v268_v20 = vsel %vm250_vm0, %v257_v17, %v267_v19  ;;  %vm420_vm8 = vmand %vm418_vm5, %vm419_vm6 }
  0x39   : > { %v270_v21 = vsub.f32 %v241_v2, %v268_v20  ;;  %vm424_vm9 = vmand %vm423_vm7, %vm419_vm6 }
  0x3b   : > { %v271_v22 = vmul.f32 1.442695, %v270_v21 }
  0x3d   : > { %628 = vpow2.f32 %v271_v22 }
  0x43   : > { %v629_v23 = vpop.eup %628 }
  0x44   : > { %274 = vst [vmem:[#allocation1] ss:$2 sm:$0xff] %v629_v23 }
  0x4b   : > { %v275_v24 = vld.sshfl [vmem:[#allocation1] sm:$0xff pattern:$0x75316420]  ;;  %v276_v25 = vld.sshfl [vmem:[#allocation1 + $0x8] sm:$0xff pattern:$0x75316420] }
  0x4c   : > { %v279_v26 = vsel %vm250_vm0, %v275_v24, 0.0  ;;  %v286_v27 = vsel %vm250_vm0, %v276_v25, 0.0 }
  0x4d   : > { %v280_v28 = vrot.slane %v279_v26, 4  ;;  %v287_v29 = vrot.slane %v286_v27, 4 }
  0x4f   : > { %v281_v30 = vadd.f32 %v280_v28, %v279_v26  ;;  %v288_v31 = vadd.f32 %v287_v29, %v286_v27 }
  0x51   : > { %v282_v32 = vrot.slane %v281_v30, 2  ;;  %v289_v33 = vrot.slane %v288_v31, 2 }
  0x53   : > { %v283_v34 = vadd.f32 %v282_v32, %v281_v30  ;;  %v290_v35 = vadd.f32 %v289_v33, %v288_v31 }
  0x55   : > { %v284_v36 = vrot.slane %v283_v34, 1  ;;  %v291_v37 = vrot.slane %v290_v35, 1 }
  0x57   : > { %v285_v38 = vadd.f32 %v284_v36, %v283_v34  ;;  %v292_v39 = vadd.f32 %v291_v37, %v290_v35 }
  0x59   : > { %630 = vlog2.f32 %v285_v38 }
  0x5a   : > { %632 = vlog2.f32 %v292_v39 }
  0x5f   : > { %v631_v40 = vpop.eup %630 }
  0x60   : > { %v633_v41 = vpop.eup %632  ;;  %v294_v42 = vmul.f32 0.6931472, %v631_v40 }
  0x61   : > { %v296_v43 = vmul.f32 0.6931472, %v633_v41 }
  0x62   : > { %v297_v44 = vadd.f32 %v294_v42, %v257_v17 }
  0x63   : > { %v298_v45 = vadd.f32 %v296_v43, %v264_v18 }
  0x65   : > { %v301_v46 = vrot.slane %v298_v45, 4 }
  0x67   : > { %v302_v47 = vsel %vm250_vm0, %v297_v44, %v301_v46 }
  0x68   : > { %v304_v48 = vsub.f32 %v241_v2, %v302_v47 }
  0x6a   : > { %317 = vst [vmem:[#allocation1] ss:$2 sm:$0xff] %v304_v48 }
  0x71   : > { %v318_v51 = vld.sshfl [vmem:[#allocation1] sm:$0xff pattern:$0x75316420]  ;;  %v319_v52 = vld.sshfl [vmem:[#allocation1 + $0x8] sm:$0xff pattern:$0x75316420] }
  0x72   : > { %342 = vst [vmem:[#allocation1] ss:$2 sm:$0xff] %v304_v48 }
  0x79   : > { %v343_v58 = vld.sshfl [vmem:[#allocation1] sm:$0xff pattern:$0x75316420]  ;;  %v344_v59 = vld.sshfl [vmem:[#allocation1 + $0x8] sm:$0xff pattern:$0x75316420] }
  0x7a   : > { %v347_v60 = vsel %vm880_vm1, %v343_v58, 0.0  ;;  %v348_v61 = vsel %vm885_vm2, %v344_v59, 0.0 }
  0x7b   : > { %v349_v62 = vsel %vm250_vm0, %v347_v60, 0.0  ;;  %v356_v63 = vsel %vm250_vm0, %v348_v61, 0.0 }
  0x7c   : > { %v350_v0 = vrot.slane %v349_v62, 4  ;;  %v357_v1 = vrot.slane %v356_v63, 4 }
  0x7e   : > { %v358_v2 = vadd.f32 %v357_v1, %v356_v63  ;;  %v351_v3 = vadd.f32 %v350_v0, %v349_v62 }
  0x80   : > { %v359_v4 = vrot.slane %v358_v2, 2  ;;  %v352_v5 = vrot.slane %v351_v3, 2 }
  0x82   : > { %v360_v6 = vadd.f32 %v359_v4, %v358_v2  ;;  %v353_v9 = vadd.f32 %v352_v5, %v351_v3 }
  0x84   : > { %v361_v12 = vrot.slane %v360_v6, 1  ;;  %v354_v16 = vrot.slane %v353_v9, 1 }
  0x86   : > { %v362_v17 = vadd.f32 %v361_v12, %v360_v6  ;;  %v355_v18 = vadd.f32 %v354_v16, %v353_v9 }
  0x88   : > { %v365_v19 = vmul.f32 1.442695, %v362_v17  ;;  %v363_v21 = vmul.f32 1.442695, %v355_v18 }
  0x8a   : > { %634 = vpow2.f32 %v365_v19 }
  0x8b   : > { %636 = vpow2.f32 %v363_v21 }
  0x90   : > { %v635_v32 = vpop.eup %634 }
  0x91   : > { %v637_v35 = vpop.eup %636  ;;  %v368_v38 = vsub.f32 1.0, %v635_v32 }
  0x92   : > { %v367_v41 = vsub.f32 1.0, %v637_v35 }
  0x93   : > { %v370_v44 = vmul.f32 %v368_v38, %v368_v38 }
  0x94   : > { %v314_v20 = vpop.permute.xlu0 %313  ;;  %v369_v47 = vmul.f32 %v367_v41, %v367_v41 }
  0x95   : > { %v322_v22 = vmul.f32 %v318_v51, %v314_v20  ;;  %v323_v23 = vmul.f32 %v319_v52, %v314_v20 }
  0x97   : > { %v324_v24 = vsel %vm880_vm1, %v322_v22, 0.0  ;;  %v325_v25 = vsel %vm885_vm2, %v323_v23, 0.0 }
  0x98   : > { %v326_v26 = vsel %vm250_vm0, %v324_v24, 0.0  ;;  %v333_v27 = vsel %vm250_vm0, %v325_v25, 0.0 }
  0x99   : > { %v327_v28 = vrot.slane %v326_v26, 4  ;;  %v334_v29 = vrot.slane %v333_v27, 4 }
  0x9b   : > { %v328_v30 = vadd.f32 %v327_v28, %v326_v26  ;;  %v335_v31 = vadd.f32 %v334_v29, %v333_v27 }
  0x9d   : > { %v329_v33 = vrot.slane %v328_v30, 2  ;;  %v336_v34 = vrot.slane %v335_v31, 2 }
  0x9f   : > { %v330_v36 = vadd.f32 %v329_v33, %v328_v30  ;;  %v337_v37 = vadd.f32 %v336_v34, %v335_v31 }
  0xa1   : > { %v331_v39 = vrot.slane %v330_v36, 1  ;;  %v338_v40 = vrot.slane %v337_v37, 1 }
  0xa3   : > { %v332_v42 = vadd.f32 %v331_v39, %v330_v36  ;;  %v339_v43 = vadd.f32 %v338_v40, %v337_v37 }
  0xa5   : > { %v340_v45 = vsub.f32 0.0, %v332_v42  ;;  %v341_v46 = vsub.f32 0.0, %v339_v43 }
  0xa7   : > { %v372_v48 = vmul.f32 %v370_v44, %v341_v46  ;;  %v371_v51 = vmul.f32 %v369_v47, %v340_v45 }
  0xa9   : > { %v376_v52 = vrot.slane %v372_v48, 7 }
  0xaa   : > { %v408_v61 = vpop.xlane.xlu1 %407 }
  0xab   : > { %v378_v54 = vsel %vm377_vm4, %v371_v51, %v376_v52  ;;  %v409_v62 = vrot.slane %v408_v61, 4 }
  0xac   : > { %v380_v55 = vsel %vm373_vm3, %v378_v54, 0.0 }
  0xad   : > { %v382_v56 = vperm.slane %v380_v55, 0  ;;  %v383_v57 = vperm.slane %v380_v55, 1  ;;  %v410_v63 = vadd.f32 %v409_v62, %v408_v61 }
  0xaf   : > { %v386_v58 = vsel %vm377_vm4, %v382_v56, 0.0  ;;  %v387_v59 = vsel %vm377_vm4, %v383_v57, 0.0  ;;  %v411_v0 = vrot.slane %v410_v63, 2 }
  0xb0   : > { %v388_v60 = vadd.f32 %v387_v59, %v386_v58 }
  0xb1   : > { %v412_v4 = vadd.f32 %v411_v0, %v410_v63 }
  0xb2   : > { %389 = vadd.xlane.f32.xlu0 %v388_v60 }
  0xb3   : > { %v413_v6 = vrot.slane %v412_v4, 1 }
  0xb5   : > { %v414_v9 = vadd.f32 %v413_v6, %v412_v4 }
 0x125   : > { %v390_v1 = vpop.xlane.xlu0 %389 }
 0x126   : > { %v391_v2 = vrot.slane %v390_v1, 4 }
 0x128   : > { %v392_v3 = vadd.f32 %v391_v2, %v390_v1 }
 0x12a   : > { %v393_v5 = vrot.slane %v392_v3, 2 }
 0x12c   : > { %v394_v50 = vadd.f32 %v393_v5, %v392_v3 }
 0x12e   : > { %v395_v7 = vrot.slane %v394_v50, 1 }
 0x130   : > { %v396_v8 = vadd.f32 %v395_v7, %v394_v50 }
 0x132   : > { %559 = vpush %v396_v8 }
 0x133   : > { %561 = vpush %v414_v9 }
 0x163   : > { %s560_s9 = spop %559 }
 0x164   : > { %v421_v11 = vstv %s560_s9  ;;  %s562_s21 = spop %561 }
 0x165   : > { %v422_v49 = vsel %vm420_vm8, %v421_v11, 0.0  ;;  %v425_v12 = vstv %s562_s21 }
 0x166   : > { %v426_v13 = vsel %vm424_vm9, %v425_v12, 0.0 }
 0x167   : > { %v427_v14 = vadd.f32 %v426_v13, %v422_v49 }
 0x169   : > { %428 = vst [vmem:[%s230_s10] sm:$0xff] %v427_v14 }
 0x16a   : > { %695 = shalt.err (!%p692_p0)
}
 0x16b   : > { %565 = dma.vmem_to_hbm [thread:$0]  (%p825_p9), %s444_s19, 128, %s446_s15, %s430_s22  }
 0x16c PF: > { %s457_s11 = sand.u32 1, %s730_s12   ;;  %p572_p1 = pnand %p546_p12, %p832_p11 }
 0x16d   : > { %s458_s5 = scalar_lea.sflag [#allocation4], %s457_s11 }
 0x16e   : > { %p573_p2 = pneg %p572_p1 }
 0x170   : > { %725 = dma.done.wait (%p573_p2), %s458_s5, 128  }
 0x171   : > { %727 = vsyncadd (%p573_p2), %s458_s5, 4294967168  ;;  %s19_s17 = sadd.s32 1, %s750_s17   ;;  %s966_s12 = smov %s734_s13 }
 0x172   : > { %p16_p3 = scmp.ge.s32.totalorder %s19_s17, 4   ;;  %s967_s13 = smov %s738_s14 }
 0x173   : > { %s968_s14 = smov %s830_s26  ;;  %s969_s15 = smov %s746_s16 }
 0x174   : > { %s970_s16 = smov %s972_s20  ;;  %18 = sbr.rel (!%p16_p3) target bundleno = 6 (0x6), region = 80 }
 0x179   :  { %464 = vsyncpa [#allocation3], 1 }
 0x17a   :  { %466 = vsyncpa [#allocation3 + $0x1], 1 }
 0x17b   :  { %467 = vsyncpa [#allocation4], 1 }
 0x17c   :  { %469 = vsyncpa [#allocation4 + $0x1], 1 }

</bundles_post_ra>
